<compile_context>
chip_gen: v7x
topology: tpu7x:2x2x1
jax: 0.10.0
libtpu: 0.0.40
codegen_flags: <defaults>
</compile_context>

<pallas_src>
import jax
import jax.numpy as jnp
from jax.experimental import pallas as pl
from jax.experimental.pallas import tpu as pltpu


def _round_up(n, m):
    return ((n + m - 1) // m) * m


def mlp_kernel(x_ref, w1_ref, b1_ref, w2_ref, b2_ref, w3_ref, b3_ref, o_ref):
    # One batch tile per grid step. bf16 operands feed the MXU, accumulation
    # and the bias/ReLU epilogue stay in fp32 (VPU), activations are cast back
    # to bf16 only to feed the next MXU stage.
    x = x_ref[...]                         # (TB, 784) bf16
    b1 = b1_ref[...]                       # (1, 128) fp32
    b2 = b2_ref[...]                       # (1, 128) fp32 (zero-padded 64->128)
    b3 = b3_ref[...]                       # (1, 128) fp32 (zero-padded 10->128)

    h1 = jnp.dot(x, w1_ref[...], preferred_element_type=jnp.float32) + b1
    h1 = jnp.maximum(h1, 0.0).astype(jnp.bfloat16)

    h2 = jnp.dot(h1, w2_ref[...], preferred_element_type=jnp.float32) + b2
    h2 = jnp.maximum(h2, 0.0).astype(jnp.bfloat16)

    o = jnp.dot(h2, w3_ref[...], preferred_element_type=jnp.float32) + b3
    o_ref[...] = o.astype(o_ref.dtype)     # (TB, 128) fp32, lane-dense store


def simple_nn_forward(x_nchw, params):
    """Forward pass matching SimpleNN.forward. x_nchw: (B, 1, 28, 28) float32."""
    w1, b1, w2, b2, w3, b3 = params
    B = x_nchw.shape[0]
    x_flat = x_nchw.reshape(B, 28 * 28)    # == x.view(-1, 784)

    # ---- batch tiling: pad B to sublane/tile granularity ----
    TB = min(2048, _round_up(B, 16))       # 16-row granularity (bf16 packing)
    B_pad = _round_up(B, TB)
    if B_pad != B:
        x_flat = jnp.pad(x_flat, ((0, B_pad - B), (0, 0)))
    x_bf16 = x_flat.astype(jnp.bfloat16)

    # ---- lane-dense padding of the narrow layers (exact: zero padding) ----
    # hidden2: 64 -> 128 columns, output: 10 -> 128 columns.
    w1c = w1.astype(jnp.bfloat16)                                   # (784, 128)
    b1p = b1.astype(jnp.float32)                                    # (1, 128)
    w2p = jnp.pad(w2, ((0, 0), (0, 64))).astype(jnp.bfloat16)       # (128, 128)
    b2p = jnp.pad(b2, ((0, 0), (0, 64))).astype(jnp.float32)        # (1, 128)
    w3p = jnp.pad(w3, ((0, 64), (0, 118))).astype(jnp.bfloat16)     # (128, 128)
    b3p = jnp.pad(b3, ((0, 0), (0, 118))).astype(jnp.float32)       # (1, 128)

    const = lambda shape: pl.BlockSpec(shape, lambda i: (0, 0))

    out = pl.pallas_call(
        mlp_kernel,
        out_shape=jax.ShapeDtypeStruct((B_pad, 128), jnp.float32),
        grid_spec=pltpu.PrefetchScalarGridSpec(
            num_scalar_prefetch=0,
            grid=(B_pad // TB,),
            in_specs=[
                pl.BlockSpec((TB, 784), lambda i: (i, 0)),   # streamed batch tile
                const((784, 128)), const((1, 128)),          # fc1 (resident)
                const((128, 128)), const((1, 128)),          # fc2 (resident)
                const((128, 128)), const((1, 128)),          # fc3 (resident)
            ],
            out_specs=pl.BlockSpec((TB, 128), lambda i: (i, 0)),
        ),
        compiler_params=pltpu.CompilerParams(
            dimension_semantics=("parallel",),   # batch axis -> both TCs on v7x
        ),
    )(x_bf16, w1c, b1p, w2p, b2p, w3p, b3p)

    return out[:B, :10]


def init_params(key):
    """Deterministic init mimicking PyTorch Linear default (U[-1/sqrt(fan_in), 1/sqrt(fan_in)])."""
    ks = jax.random.split(key, 6)

    def linear(kw, kb, fan_in, fan_out):
        bound = 1.0 / jnp.sqrt(fan_in)
        w = jax.random.uniform(kw, (fan_in, fan_out), jnp.float32, -bound, bound)
        b = jax.random.uniform(kb, (1, fan_out), jnp.float32, -bound, bound)
        return w, b

    w1, b1 = linear(ks[0], ks[1], 784, 128)
    w2, b2 = linear(ks[2], ks[3], 128, 64)
    w3, b3 = linear(ks[4], ks[5], 64, 10)
    return (w1, b1, w2, b2, w3, b3)


if __name__ == "__main__":
    key = jax.random.PRNGKey(0)
    k_params, k_x = jax.random.split(key)
    params = init_params(k_params)

    # Small batch of fake Fashion-MNIST images, NCHW like PyTorch.
    B = 2
    x = jax.random.normal(k_x, (B, 1, 28, 28), jnp.float32)

    logits = simple_nn_forward(x, params)
    logits = jax.block_until_ready(logits)

    # Sanity check against a full-fp32 plain-JAX reference. The kernel uses
    # bf16 matmul inputs (fp32 accumulation), so tolerances are loosened.
    w1, b1, w2, b2, w3, b3 = params
    xf = x.reshape(B, 784)
    ref = jnp.maximum(xf @ w1 + b1, 0.0)
    ref = jnp.maximum(ref @ w2 + b2, 0.0)
    ref = ref @ w3 + b3

    assert logits.shape == (B, 10)
    assert jnp.allclose(logits, ref, atol=5e-2, rtol=5e-2), (
        f"max abs err {jnp.max(jnp.abs(logits - ref))}"
    )

    print("KERNEL_OK")
</pallas_src>

<mosaic_0001>
module attributes {stable_mosaic.version = 11 : i64} {
  func.func @mlp_kernel(%arg0: i32, %arg1: memref<16x784xbf16, #tpu.memory_space<vmem>>, %arg2: memref<784x128xbf16, #tpu.memory_space<vmem>>, %arg3: memref<1x128xf32, #tpu.memory_space<vmem>>, %arg4: memref<128x128xbf16, #tpu.memory_space<vmem>>, %arg5: memref<1x128xf32, #tpu.memory_space<vmem>>, %arg6: memref<128x128xbf16, #tpu.memory_space<vmem>>, %arg7: memref<1x128xf32, #tpu.memory_space<vmem>>, %arg8: memref<16x128xf32, #tpu.memory_space<vmem>>) attributes {dimension_semantics = [#tpu.dimension_semantics<parallel>], iteration_bounds = array<i64: 1>, scalar_prefetch = 0 : i64, scratch_operands = 0 : i64, tpu.core_type = #tpu.core_type<tc>, window_params = [{transform_indices = @transform_0, window_bounds = array<i64: 16, 784>}, {pipeline_mode = #tpu.pipeline_mode<synchronous>, transform_indices = @transform_1, window_bounds = array<i64: 784, 128>}, {pipeline_mode = #tpu.pipeline_mode<synchronous>, transform_indices = @transform_2, window_bounds = array<i64: 1, 128>}, {pipeline_mode = #tpu.pipeline_mode<synchronous>, transform_indices = @transform_3, window_bounds = array<i64: 128, 128>}, {pipeline_mode = #tpu.pipeline_mode<synchronous>, transform_indices = @transform_4, window_bounds = array<i64: 1, 128>}, {pipeline_mode = #tpu.pipeline_mode<synchronous>, transform_indices = @transform_5, window_bounds = array<i64: 128, 128>}, {pipeline_mode = #tpu.pipeline_mode<synchronous>, transform_indices = @transform_6, window_bounds = array<i64: 1, 128>}, {transform_indices = @transform_7, window_bounds = array<i64: 16, 128>}]} {
    %c0 = arith.constant 0 : index
    %c0_0 = arith.constant 0 : index
    %0 = vector.load %arg1[%c0, %c0_0] : memref<16x784xbf16, #tpu.memory_space<vmem>>, vector<16x784xbf16>
    %c0_1 = arith.constant 0 : index
    %c0_2 = arith.constant 0 : index
    %1 = vector.load %arg3[%c0_1, %c0_2] : memref<1x128xf32, #tpu.memory_space<vmem>>, vector<1x128xf32>
    %c0_3 = arith.constant 0 : index
    %c0_4 = arith.constant 0 : index
    %2 = vector.load %arg5[%c0_3, %c0_4] : memref<1x128xf32, #tpu.memory_space<vmem>>, vector<1x128xf32>
    %c0_5 = arith.constant 0 : index
    %c0_6 = arith.constant 0 : index
    %3 = vector.load %arg7[%c0_5, %c0_6] : memref<1x128xf32, #tpu.memory_space<vmem>>, vector<1x128xf32>
    %c0_7 = arith.constant 0 : index
    %c0_8 = arith.constant 0 : index
    %4 = vector.load %arg2[%c0_7, %c0_8] : memref<784x128xbf16, #tpu.memory_space<vmem>>, vector<784x128xbf16>
    %cst = arith.constant dense<0.000000e+00> : vector<16x128xf32>
    %5 = tpu.matmul %0, %4, %cst {dimension_numbers = #tpu.dot_dimension_numbers<[1], [0], [0], [1], [0, 0, 1, 1], [], []>} : vector<16x784xbf16>, vector<784x128xbf16>, vector<16x128xf32> -> vector<16x128xf32>
    %6 = vector.broadcast %1 : vector<1x128xf32> to vector<16x128xf32>
    %7 = arith.addf %5, %6 : vector<16x128xf32>
    %cst_9 = arith.constant 0.000000e+00 : f32
    %8 = vector.broadcast %cst_9 : f32 to vector<16x128xf32>
    %9 = arith.maximumf %7, %8 : vector<16x128xf32>
    %10 = arith.truncf %9 : vector<16x128xf32> to vector<16x128xbf16>
    %c0_10 = arith.constant 0 : index
    %c0_11 = arith.constant 0 : index
    %11 = vector.load %arg4[%c0_10, %c0_11] : memref<128x128xbf16, #tpu.memory_space<vmem>>, vector<128x128xbf16>
    %cst_12 = arith.constant dense<0.000000e+00> : vector<16x128xf32>
    %12 = tpu.matmul %10, %11, %cst_12 {dimension_numbers = #tpu.dot_dimension_numbers<[1], [0], [0], [1], [0, 0, 1, 1], [], []>} : vector<16x128xbf16>, vector<128x128xbf16>, vector<16x128xf32> -> vector<16x128xf32>
    %13 = vector.broadcast %2 : vector<1x128xf32> to vector<16x128xf32>
    %14 = arith.addf %12, %13 : vector<16x128xf32>
    %cst_13 = arith.constant 0.000000e+00 : f32
    %15 = vector.broadcast %cst_13 : f32 to vector<16x128xf32>
    %16 = arith.maximumf %14, %15 : vector<16x128xf32>
    %17 = arith.truncf %16 : vector<16x128xf32> to vector<16x128xbf16>
    %c0_14 = arith.constant 0 : index
    %c0_15 = arith.constant 0 : index
    %18 = vector.load %arg6[%c0_14, %c0_15] : memref<128x128xbf16, #tpu.memory_space<vmem>>, vector<128x128xbf16>
    %cst_16 = arith.constant dense<0.000000e+00> : vector<16x128xf32>
    %19 = tpu.matmul %17, %18, %cst_16 {dimension_numbers = #tpu.dot_dimension_numbers<[1], [0], [0], [1], [0, 0, 1, 1], [], []>} : vector<16x128xbf16>, vector<128x128xbf16>, vector<16x128xf32> -> vector<16x128xf32>
    %20 = vector.broadcast %3 : vector<1x128xf32> to vector<16x128xf32>
    %21 = arith.addf %19, %20 : vector<16x128xf32>
    %c0_17 = arith.constant 0 : index
    %c0_18 = arith.constant 0 : index
    %22 = vector.load %arg8[%c0_17, %c0_18] : memref<16x128xf32, #tpu.memory_space<vmem>>, vector<16x128xf32>
    tpu.vector_store %arg8[%c0_17, %c0_18], %21 {strides = array<i32>} : memref<16x128xf32, #tpu.memory_space<vmem>>, vector<16x128xf32>,
    return
  }
  func.func @transform_0(%arg0: i32) -> (i32, i32) {
    %c0_i32 = arith.constant 0 : i32
    %c0_i32_0 = arith.constant 0 : i32
    return %arg0, %c0_i32 : i32, i32
  }
  func.func @transform_1(%arg0: i32) -> (i32, i32) {
    %c0_i32 = arith.constant 0 : i32
    %c0_i32_0 = arith.constant 0 : i32
    %c0_i32_1 = arith.constant 0 : i32
    return %c0_i32, %c0_i32_0 : i32, i32
  }
  func.func @transform_2(%arg0: i32) -> (i32, i32) {
    %c0_i32 = arith.constant 0 : i32
    %c0_i32_0 = arith.constant 0 : i32
    %c0_i32_1 = arith.constant 0 : i32
    return %c0_i32, %c0_i32_0 : i32, i32
  }
  func.func @transform_3(%arg0: i32) -> (i32, i32) {
    %c0_i32 = arith.constant 0 : i32
    %c0_i32_0 = arith.constant 0 : i32
    %c0_i32_1 = arith.constant 0 : i32
    return %c0_i32, %c0_i32_0 : i32, i32
  }
  func.func @transform_4(%arg0: i32) -> (i32, i32) {
    %c0_i32 = arith.constant 0 : i32
    %c0_i32_0 = arith.constant 0 : i32
    %c0_i32_1 = arith.constant 0 : i32
    return %c0_i32, %c0_i32_0 : i32, i32
  }
  func.func @transform_5(%arg0: i32) -> (i32, i32) {
    %c0_i32 = arith.constant 0 : i32
    %c0_i32_0 = arith.constant 0 : i32
    %c0_i32_1 = arith.constant 0 : i32
    return %c0_i32, %c0_i32_0 : i32, i32
  }
  func.func @transform_6(%arg0: i32) -> (i32, i32) {
    %c0_i32 = arith.constant 0 : i32
    %c0_i32_0 = arith.constant 0 : i32
    %c0_i32_1 = arith.constant 0 : i32
    return %c0_i32, %c0_i32_0 : i32, i32
  }
  func.func @transform_7(%arg0: i32) -> (i32, i32) {
    %c0_i32 = arith.constant 0 : i32
    %c0_i32_0 = arith.constant 0 : i32
    return %arg0, %c0_i32 : i32, i32
  }
}

</mosaic_0001>

<bundles_post_ra>
// kernel: tpu_custom_call.1
= control target key start
LH: loop header
LB: loop body
LE: loop exit
PB: predicated region body
PF: predicated region fallthrough
CT: control target
= control target key end

     0   :  { %12 = vsyncpa [#allocation3], 0  ;;  %s1519_s0 = inlined_call_operand.hbm [shape: bf16[16,784], index: 0, kind: input, shape index: {}]   ;;  %s1520_s1 = inlined_call_operand.hbm [shape: bf16[784,128], index: 1, kind: input, shape index: {}]   ;;  %s1521_s2 = inlined_call_operand.vmem [shape: f32[1,128], index: 2, kind: input, shape index: {}]   ;;  %s1522_s3 = inlined_call_operand.hbm [shape: bf16[128,128], index: 3, kind: input, shape index: {}]   ;;  %s1523_s4 = inlined_call_operand.vmem [shape: f32[1,128], index: 4, kind: input, shape index: {}]   ;;  %s1524_s5 = inlined_call_operand.hbm [shape: bf16[128,128], index: 5, kind: input, shape index: {}]   ;;  %s1525_s6 = inlined_call_operand.vmem [shape: f32[1,128], index: 6, kind: input, shape index: {}]   ;;  %s1526_s7 = inlined_call_operand.hbm [shape: f32[16,128], index: 7, kind: output, shape index: {}]  }
   0x1   :  { %13 = vsyncpa [#allocation6], 0 }
   0x2   :  { %14 = vsyncpa [#allocation9], 0 }
   0x3   :  { %15 = vsyncpa [#allocation4], 0  ;;  %s1358_s24 = smov [#allocation5]   ;;  %s1240_s28 = scalar_lea.hbm %s1520_s1, 6272 }
   0x4   :  { %s33_s25 = sshll.u32 %s1358_s24, 4  ;;  %p1241_p0 = scmp.ne.s32.totalorder %s1520_s1, %s1240_s28  ;;  %s34_s25 = int_to_ptr.vmem [resolvable:$true] %s33_s25 }
   0x5   :  { %p1244_p1 = scmp.lt.u32.totalorder %s1240_s28, %s1520_s1 }
   0x7   :  { %p1246_p2 = pnand %p1244_p1, %p1241_p0 }
   0x9   :  { %1249 = shalt.err (!%p1246_p2)
}
   0xa   :  { %s1250_s10 = scalar_lea.vmem %s34_s25, 6272  ;;  %p1255_p4 = scmp.lt.s32.totalorder %s34_s25, %s34_s25 }
   0xb   :  { %p1251_p3 = scmp.ne.s32.totalorder %s34_s25, %s1250_s10  ;;  %p1256_p5 = scmp.lt.s32.totalorder %s1250_s10, %s1250_s10 }
   0xd   :  { %p1257_p6 = por %p1256_p5, %p1255_p4 }
   0xf   :  { %p1258_p7 = pnand %p1257_p6, %p1251_p3 }
  0x11   :  { %1261 = shalt.err (!%p1258_p7)
}
  0x12   :  { %s1359_s11 = smov 64   ;;  %s1360_s12 = smov 4  }
  0x13   :  { %39 = dma.hbm_to_vmem [thread:$0]  %s1520_s1, 6272, %s34_s25, [#allocation6], %s1359_s11, %s1359_s11, %s1360_s12  }
  0x14   :  { %s1361_s15 = smov [#allocation2]   ;;  %s1262_s19 = scalar_lea.hbm %s1519_s0, 896 }
  0x15   :  { %s21_s16 = sshll.u32 %s1361_s15, 4  ;;  %p1263_p8 = scmp.ne.s32.totalorder %s1519_s0, %s1262_s19  ;;  %s22_s16 = int_to_ptr.vmem [resolvable:$true] %s21_s16 }
  0x16   :  { %p1266_p9 = scmp.lt.u32.totalorder %s1262_s19, %s1519_s0 }
  0x18   :  { %p1268_p10 = pnand %p1266_p9, %p1263_p8 }
  0x1a   :  { %1271 = shalt.err (!%p1268_p10)
}
  0x1b   :  { %s1272_s24 = scalar_lea.vmem %s22_s16, 896  ;;  %p1277_p12 = scmp.lt.s32.totalorder %s22_s16, %s22_s16 }
  0x1c   :  { %p1273_p11 = scmp.ne.s32.totalorder %s22_s16, %s1272_s24  ;;  %p1278_p13 = scmp.lt.s32.totalorder %s1272_s24, %s1272_s24 }
  0x1e   :  { %p1279_p0 = por %p1278_p13, %p1277_p12 }
  0x20   :  { %p1280_p1 = pnand %p1279_p0, %p1273_p11 }
  0x22   :  { %1283 = shalt.err (!%p1280_p1)
}
  0x23   :  { %s1362_s1 = smov 448   ;;  %s1363_s25 = smov 28  }
  0x24   :  { %27 = dma.hbm_to_vmem [thread:$0]  %s1519_s0, 896, %s22_s16, [#allocation3], %s1362_s1, %s1362_s1, %s1363_s25  }
  0x25   :  { %s1364_s28 = smov [#allocation7]   ;;  %s1365_s30 = smov [#allocation8]  }
  0x26   :  { %s47_s29 = sshll.u32 %s1364_s28, 4  ;;  %s61_s8 = sshll.u32 %s1365_s30, 4  ;;  %s48_s29 = int_to_ptr.vmem [resolvable:$true] %s47_s29  ;;  %s1438_s8 = int_to_ptr.vmem [resolvable:$true] %s61_s8 }
  0x27   :  { %s1284_s13 = scalar_lea.hbm %s1522_s3, 1024 }
  0x28   :  { %p1285_p2 = scmp.ne.s32.totalorder %s1522_s3, %s1284_s13  ;;  %p1288_p3 = scmp.lt.u32.totalorder %s1284_s13, %s1522_s3 }
  0x2a   :  { %p1290_p4 = pnand %p1288_p3, %p1285_p2 }
  0x2c   :  { %1293 = shalt.err (!%p1290_p4)
}
  0x2d   :  { %s1294_s0 = scalar_lea.vmem %s48_s29, 1024  ;;  %p1299_p6 = scmp.lt.s32.totalorder %s48_s29, %s48_s29 }
  0x2e   :  { %p1295_p5 = scmp.ne.s32.totalorder %s48_s29, %s1294_s0  ;;  %p1300_p7 = scmp.lt.s32.totalorder %s1294_s0, %s1294_s0 }
  0x30   :  { %p1301_p8 = por %p1300_p7, %p1299_p6 }
  0x32   :  { %p1302_p9 = pnand %p1301_p8, %p1295_p5 }
  0x34   :  { %1305 = shalt.err (!%p1302_p9)
}
  0x35   :  { %53 = dma.hbm_to_vmem [thread:$0]  %s1522_s3, 1024, %s48_s29, [#allocation6], %s1359_s11, %s1359_s11, %s1360_s12  }
  0x36   :  { %s1306_s22 = scalar_lea.hbm %s1524_s5, 1024 }
  0x37   :  { %p1307_p10 = scmp.ne.s32.totalorder %s1524_s5, %s1306_s22  ;;  %p1310_p11 = scmp.lt.u32.totalorder %s1306_s22, %s1524_s5 }
  0x39   :  { %p1312_p12 = pnand %p1310_p11, %p1307_p10 }
  0x3b   :  { %1315 = shalt.err (!%p1312_p12)
}
  0x3c   :  { %s1316_s26 = scalar_lea.vmem %s1438_s8, 1024  ;;  %p1321_p0 = scmp.lt.s32.totalorder %s1438_s8, %s1438_s8 }
  0x3d   :  { %p1317_p13 = scmp.ne.s32.totalorder %s1438_s8, %s1316_s26  ;;  %p1322_p1 = scmp.lt.s32.totalorder %s1316_s26, %s1316_s26 }
  0x3f   :  { %p1323_p2 = por %p1322_p1, %p1321_p0 }
  0x41   :  { %p1324_p3 = pnand %p1323_p2, %p1317_p13 }
  0x43   :  { %1327 = shalt.err (!%p1324_p3)
}
  0x44   :  { %67 = dma.hbm_to_vmem [thread:$0]  %s1524_s5, 1024, %s1438_s8, [#allocation9], %s1359_s11, %s1359_s11, %s1360_s12  }
  0x45   :  { %1350 = dma.done.wait [#allocation3], 896  }
  0x46   :  { %1351 = vsyncadd [#allocation3], 4294966400 }
  0x47   :  { %1352 = dma.done.wait [#allocation6], 7296  }
  0x48   :  { %1353 = vsyncadd [#allocation6], 4294960000 }
  0x49   :  { %1354 = dma.done.wait [#allocation9], 1024  }
  0x4a   :  { %1355 = vsyncadd [#allocation9], 4294966272  ;;  %v1165_v0 = vld [vmem:[#allocation5 + $0x40] sm:$0xff]   ;;  %v1169_v4 = vld [vmem:[#allocation5 + $0x48] sm:$0xff]   ;;  %v1366_v38 = vmov 0.0   ;;  %vm1367_vm0 = vmmov 0  }
  0x4b   :  { %v1166_v1 = vld [vmem:[#allocation5] sm:$0xff]   ;;  %1020 = vmatprep.subr.bf16.mxu0 %v1165_v0  ;;  %v1170_v5 = vld [vmem:[#allocation5 + $0x8] sm:$0xff]   ;;  %v1173_v8 = vld [vmem:[#allocation5 + $0x50] sm:$0xff]   ;;  %vm527_vm1 = vcmask 130048   ;;  %s1368_s30 = smov [#allocation10]  }
  0x4c   :  { %v1167_v2 = vld [vmem:[#allocation5 + $0xc0] sm:$0xff]   ;;  %1021 = vmatpush3.bf16.msra.mxu0 %v1166_v1  ;;  %v1171_v6 = vld [vmem:[#allocation5 + $0xc8] sm:$0xff]   ;;  %v1174_v9 = vld [vmem:[#allocation5 + $0x10] sm:$0xff]   ;;  %s930_s8 = sshll.u32 %s1368_s30, 4  ;;  %s931_s8 = int_to_ptr.vmem [resolvable:$true] %s930_s8 }
  0x4d   :  { %v1168_v3 = vld [vmem:[#allocation5 + $0x80] sm:$0xff]   ;;  %1042 = vmatprep.subr.bf16.mxu1 %v1167_v2  ;;  %1022 = vmatprep.subr.bf16.mxu0 %v1169_v4  ;;  %v1172_v7 = vld [vmem:[#allocation5 + $0x88] sm:$0xff]   ;;  %v1175_v10 = vld [vmem:[#allocation5 + $0xd0] sm:$0xff]   ;;  %p1333_p5 = scmp.lt.s32.totalorder %s931_s8, %s931_s8 }
  0x4e   :  { %1043 = vmatpush3.bf16.msra.mxu1 %v1168_v3  ;;  %v1176_v11 = vld [vmem:[#allocation5 + $0x90] sm:$0xff]   ;;  %v1177_v12 = vld [vmem:[#allocation5 + $0x58] sm:$0xff]   ;;  %v1181_v16 = vld [vmem:[#allocation5 + $0x60] sm:$0xff]  }
  0x4f   :  { %1044 = vmatprep.subr.bf16.mxu1 %v1171_v6  ;;  %v1178_v13 = vld [vmem:[#allocation5 + $0x18] sm:$0xff]   ;;  %v1182_v17 = vld [vmem:[#allocation5 + $0x20] sm:$0xff]   ;;  %v1185_v20 = vld [vmem:[#allocation5 + $0x68] sm:$0xff]  }
  0x50   :  { %1023 = vmatpush3.bf16.msra.mxu0 %v1170_v5  ;;  %v1179_v14 = vld [vmem:[#allocation5 + $0xd8] sm:$0xff]   ;;  %v1183_v18 = vld [vmem:[#allocation5 + $0xe0] sm:$0xff]   ;;  %v1186_v21 = vld [vmem:[#allocation5 + $0x28] sm:$0xff]  }
  0x51   :  { %1024 = vmatprep.subr.bf16.mxu0 %v1173_v8  ;;  %v1180_v15 = vld [vmem:[#allocation5 + $0x98] sm:$0xff]   ;;  %v1184_v19 = vld [vmem:[#allocation5 + $0xa0] sm:$0xff]   ;;  %v1187_v22 = vld [vmem:[#allocation5 + $0xe8] sm:$0xff]  }
  0x52   :  { %1045 = vmatpush3.bf16.msra.mxu1 %v1172_v7  ;;  %v1188_v23 = vld [vmem:[#allocation5 + $0xa8] sm:$0xff]   ;;  %v1189_v24 = vld [vmem:[#allocation5 + $0x70] sm:$0xff]   ;;  %v1193_v28 = vld [vmem:[#allocation5 + $0x78] sm:$0xff]  }
  0x53   :  { %1046 = vmatprep.subr.bf16.mxu1 %v1175_v10  ;;  %v1190_v25 = vld [vmem:[#allocation5 + $0x30] sm:$0xff]   ;;  %v1194_v29 = vld [vmem:[#allocation5 + $0x38] sm:$0xff]   ;;  %v1196_v31 = vld [vmem:[#allocation2] ss:$28 sps:$4 sm:$0xff]  }
  0x54   :  { %1025 = vmatpush3.bf16.msra.mxu0 %v1174_v9  ;;  %v1191_v26 = vld [vmem:[#allocation5 + $0xf0] sm:$0xff]   ;;  %v1195_v30 = vld [vmem:[#allocation5 + $0xf8] sm:$0xff]   ;;  %v1198_v32 = vld [vmem:[#allocation2 + $0x4] ss:$28 sps:$4 sm:$0xff]  }
  0x55   :  { %1026 = vmatprep.subr.bf16.mxu0 %v1177_v12  ;;  %v1192_v27 = vld [vmem:[#allocation5 + $0xb0] sm:$0xff]   ;;  %v1199_v33 = vld [vmem:[#allocation5 + $0xb8] sm:$0xff]   ;;  %563 = vmatprep.mubr.bf16.mxu0 %v1198_v32  ;;  %v1200_v34 = vld [vmem:[#allocation5 + $0x140] sm:$0xff]  }
  0x56   :  { %1047 = vmatpush3.bf16.msra.mxu1 %v1176_v11  ;;  %v1201_v35 = vld [vmem:[#allocation2 + $0x8] ss:$28 sps:$4 sm:$0xff]   ;;  %v1204_v37 = vld [vmem:[#allocation5 + $0x100] sm:$0xff]   ;;  %v1209_v43 = vld [vmem:[#allocation5 + $0x158] sm:$0xff]  }
  0x57   :  { %1048 = vmatprep.subr.bf16.mxu1 %v1179_v14  ;;  %v1203_v36 = vld [vmem:[#allocation2 + $0xc] ss:$28 sps:$4 sm:$0xff]   ;;  %v1205_v39 = vld [vmem:[#allocation5 + $0x148] sm:$0xff]   ;;  %v1210_v44 = vld [vmem:[#allocation5 + $0x118] sm:$0xff]  }
  0x58   :  { %1027 = vmatpush3.bf16.msra.mxu0 %v1178_v13  ;;  %604 = vmatprep.mubr.bf16.mxu1 %v1203_v36  ;;  %v1206_v40 = vld [vmem:[#allocation5 + $0x108] sm:$0xff]   ;;  %v1207_v41 = vld [vmem:[#allocation5 + $0x150] sm:$0xff]   ;;  %v1211_v45 = vld [vmem:[#allocation5 + $0x160] sm:$0xff]  }
  0x59   :  { %1028 = vmatprep.subr.bf16.mxu0 %v1181_v16  ;;  %v1208_v42 = vld [vmem:[#allocation5 + $0x110] sm:$0xff]   ;;  %v1212_v46 = vld [vmem:[#allocation5 + $0x120] sm:$0xff]   ;;  %v1213_v47 = vld [vmem:[#allocation5 + $0x168] sm:$0xff]  }
  0x5a   :  { %1049 = vmatpush3.bf16.msra.mxu1 %v1180_v15  ;;  %v1219_v48 = vld [vmem:[#allocation5 + $0x180] sm:$0xff]   ;;  %v1214_v49 = vld [vmem:[#allocation5 + $0x128] sm:$0xff]   ;;  %v1222_v50 = vld [vmem:[#allocation2 + $0x14] ss:$28 sps:$4 sm:$0xff]  }
  0x5b   :  { %1050 = vmatprep.subr.bf16.mxu1 %v1183_v18  ;;  %v1215_v51 = vld [vmem:[#allocation5 + $0x170] sm:$0xff]   ;;  %v1223_v52 = vld [vmem:[#allocation2 + $0x18] ss:$28 sps:$4 sm:$0xff]   ;;  %v1224_v57 = vld [vmem:[#allocation7] sm:$0xff]  }
  0x5c   :  { %1029 = vmatpush3.bf16.msra.mxu0 %v1182_v17  ;;  %v1216_v53 = vld [vmem:[#allocation5 + $0x130] sm:$0xff]   ;;  %v1217_v54 = vld [vmem:[#allocation5 + $0x178] sm:$0xff]   ;;  %v1227_v60 = vld [vmem:[#allocation7 + $0x18] sm:$0xff]  }
  0x5d   :  { %1030 = vmatprep.subr.bf16.mxu0 %v1185_v20  ;;  %v1218_v55 = vld [vmem:[#allocation5 + $0x138] sm:$0xff]   ;;  %v1225_v58 = vld [vmem:[#allocation7 + $0x8] sm:$0xff]   ;;  %v1228_v61 = vld [vmem:[#allocation7 + $0x20] sm:$0xff]  }
  0x5e   :  { %1051 = vmatpush3.bf16.msra.mxu1 %v1184_v19  ;;  %v1220_v56 = vld [vmem:[#allocation2 + $0x10] ss:$28 sps:$4 sm:$0xff]   ;;  %v1231_v0 = vld [vmem:[#allocation7 + $0x38] sm:$0xff]   ;;  %v1232_v1 = vld [vmem:[#allocation8] sm:$0xff]  }
  0x5f   :  { %1052 = vmatprep.subr.bf16.mxu1 %v1187_v22  ;;  %v1226_v59 = vld [vmem:[#allocation7 + $0x10] sm:$0xff]   ;;  %v1229_v62 = vld [vmem:[#allocation7 + $0x28] sm:$0xff]   ;;  %v1235_v4 = vld [vmem:[#allocation8 + $0x18] sm:$0xff]  }
  0x60   :  { %1031 = vmatpush3.bf16.msra.mxu0 %v1186_v21  ;;  %v1230_v63 = vld [vmem:[#allocation7 + $0x30] sm:$0xff]   ;;  %v1233_v2 = vld [vmem:[#allocation8 + $0x8] sm:$0xff]   ;;  %v1236_v5 = vld [vmem:[#allocation8 + $0x20] sm:$0xff]  }
  0x61   :  { %1032 = vmatprep.subr.bf16.mxu0 %v1189_v24  ;;  %v1234_v3 = vld [vmem:[#allocation8 + $0x10] sm:$0xff]   ;;  %v1237_v6 = vld [vmem:[#allocation8 + $0x28] sm:$0xff]   ;;  %v944_v8 = vld [vmem:[%s1521_s2] ss:$0 sm:$0xff] }
  0x62   :  { %1053 = vmatpush3.bf16.msra.mxu1 %v1188_v23 }
  0x63   :  { %1054 = vmatprep.subr.bf16.mxu1 %v1191_v26 }
  0x64   :  { %1033 = vmatpush3.bf16.msra.mxu0 %v1190_v25 }
  0x65   :  { %1034 = vmatprep.subr.bf16.mxu0 %v1193_v28 }
  0x66   :  { %1055 = vmatpush3.bf16.msra.mxu1 %v1192_v27 }
  0x67   :  { %1056 = vmatprep.subr.bf16.mxu1 %v1195_v30 }
  0x68   :  { %1035 = vmatpush3.bf16.msra.mxu0 %v1194_v29 }
  0x69   :  { %1064 = vmatprep.subr.bf16.mxu0 %v1200_v34 }
  0x6a   :  { %1057 = vmatpush3.bf16.msra.mxu1 %v1199_v33 }
  0x6b   :  { %564 = vmatmul.mubr.bf16.vlgmr.msra.gmra.mrb[0].mxu0 %v1196_v31  ;;  %1106 = vmatprep.subr.bf16.mxu1 %v1366_v38 }
  0x6c   :  { %1065 = vmatpush3.bf16.msra.mxu0 %v1204_v37  ;;  %645 = vmatprep.mubr.bf16.mxu0 %v1222_v50 }
  0x6d   :  { %605 = vmatmul.mubr.bf16.vlgmr.msra.gmra.mrb[0].mxu1 %v1201_v35  ;;  %1066 = vmatprep.subr.bf16.mxu0 %v1205_v39 }
  0x6e   :  { %1108 = vmatprep.mubr.msk.bf16.mxu1 %vm1367_vm0, %v1366_v38  ;;  %1107 = vmatpush3.bf16.msra.mxu1 %v1219_v48 }
  0x6f   :  { %1112 = vmatprep.subr.bf16.mxu1 %v1366_v38 }
  0x70   :  { %1067 = vmatpush3.bf16.msra.mxu0 %v1206_v40 }
  0x71   :  { %1068 = vmatprep.subr.bf16.mxu0 %v1207_v41 }
  0x74   :  { %1069 = vmatpush3.bf16.msra.mxu0 %v1208_v42  ;;  %v1238_v42 = vld [vmem:[#allocation8 + $0x30] sm:$0xff]  }
  0x75   :  { %1070 = vmatprep.subr.bf16.mxu0 %v1209_v43  ;;  %1109 = vmatmul.mubr.msk.bf16.vlgmr.msra.gmra.mrb[4].mxu1 %vm527_vm1, %v1223_v52  ;;  %v1239_v43 = vld [vmem:[#allocation8 + $0x38] sm:$0xff]  }
  0x76   :  { %1128 = vmatprep.mubr.msk.bf16.mxu1 %vm1367_vm0, %v1366_v38  ;;  %1113 = vmatpush3.bf16.msra.mxu1 %v1224_v57 }
  0x77   :  { %1114 = vmatprep.subr.bf16.mxu1 %v1366_v38 }
  0x78   :  { %1071 = vmatpush3.bf16.msra.mxu0 %v1210_v44  ;;  %v1002_v44 = vld [vmem:[%s1523_s4] ss:$0 sm:$0xff]  ;;  %s1328_s4 = scalar_lea.vmem %s931_s8, 256 }
  0x79   :  { %1072 = vmatprep.subr.bf16.mxu0 %v1211_v45  ;;  %p1329_p4 = scmp.ne.s32.totalorder %s931_s8, %s1328_s4  ;;  %p1334_p6 = scmp.lt.s32.totalorder %s1328_s4, %s1328_s4 }
  0x7a   :  { %1115 = vmatpush3.bf16.msra.mxu1 %v1225_v58 }
  0x7b   :  { %1116 = vmatprep.subr.bf16.mxu1 %v1366_v38  ;;  %p1335_p7 = por %p1334_p6, %p1333_p5 }
  0x7c   :  { %1073 = vmatpush3.bf16.msra.mxu0 %v1212_v46 }
  0x7d   :  { %1074 = vmatprep.subr.bf16.mxu0 %v1213_v47  ;;  %p1336_p8 = pnand %p1335_p7, %p1329_p4 }
  0x7e   :  { %1117 = vmatpush3.bf16.msra.mxu1 %v1226_v59 }
  0x7f   :  { %1118 = vmatprep.subr.bf16.mxu1 %v1366_v38 }
  0x80   :  { %1075 = vmatpush3.bf16.msra.mxu0 %v1214_v49 }
  0x81   :  { %1076 = vmatprep.subr.bf16.mxu0 %v1215_v51 }
  0x82   :  { %1119 = vmatpush3.bf16.msra.mxu1 %v1227_v60 }
  0x83   :  { %1120 = vmatprep.subr.bf16.mxu1 %v1366_v38 }
  0x84   :  { %1077 = vmatpush3.bf16.msra.mxu0 %v1216_v53 }
  0x85   :  { %1078 = vmatprep.subr.bf16.mxu0 %v1217_v54 }
  0x86   :  { %1121 = vmatpush3.bf16.msra.mxu1 %v1228_v61 }
  0x87   :  { %1122 = vmatprep.subr.bf16.mxu1 %v1366_v38 }
  0x88   :  { %1079 = vmatpush3.bf16.msra.mxu0 %v1218_v55 }
  0x89   :  { %1132 = vmatprep.subr.bf16.mxu0 %v1366_v38 }
  0x8a   :  { %1123 = vmatpush3.bf16.msra.mxu1 %v1229_v62 }
  0x8b   :  { %646 = vmatmul.mubr.bf16.vlgmr.msra.gmra.mrb[4].mxu0 %v1220_v56  ;;  %1124 = vmatprep.subr.bf16.mxu1 %v1366_v38 }
  0x8c   :  { %1148 = vmatprep.mubr.msk.bf16.mxu0 %vm1367_vm0, %v1366_v38  ;;  %1133 = vmatpush3.bf16.msra.mxu0 %v1232_v1 }
  0x8d   :  { %1134 = vmatprep.subr.bf16.mxu0 %v1366_v38 }
  0x8e   :  { %1125 = vmatpush3.bf16.msra.mxu1 %v1230_v63 }
  0x8f   :  { %1126 = vmatprep.subr.bf16.mxu1 %v1366_v38 }
  0x90   :  { %1135 = vmatpush3.bf16.msra.mxu0 %v1233_v2 }
  0x91   :  { %1136 = vmatprep.subr.bf16.mxu0 %v1366_v38 }
  0x92   :  { %1127 = vmatpush3.bf16.msra.mxu1 %v1231_v0 }
  0x94   :  { %1137 = vmatpush3.bf16.msra.mxu0 %v1234_v3 }
  0x95   :  { %1138 = vmatprep.subr.bf16.mxu0 %v1366_v38 }
  0x98   :  { %1139 = vmatpush3.bf16.msra.mxu0 %v1235_v4 }
  0x99   :  { %1140 = vmatprep.subr.bf16.mxu0 %v1366_v38 }
  0x9c   :  { %1141 = vmatpush3.bf16.msra.mxu0 %v1236_v5 }
  0x9d   :  { %1142 = vmatprep.subr.bf16.mxu0 %v1366_v38 }
  0xa0   :  { %1143 = vmatpush3.bf16.msra.mxu0 %v1237_v6 }
  0xa1   :  { %1144 = vmatprep.subr.bf16.mxu0 %v1366_v38 }
  0xa4   :  { %1145 = vmatpush3.bf16.msra.mxu0 %v1238_v42 }
  0xa5   :  { %1146 = vmatprep.subr.bf16.mxu0 %v1366_v38  ;;  %v1011_v38 = vld [vmem:[%s1525_s6] ss:$0 sm:$0xff] }
  0xa8   :  { %1147 = vmatpush3.bf16.msra.mxu0 %v1239_v43 }
 0x13e   :  { %v1036_v7 = vpop.f32.mrb[0].mxu0 }
 0x13f   :  { %v1037_v9 = vpop.f32.mrb[1].mxu0 }
 0x140   :  { %v1038_v10 = vadd.f32 %v1037_v9, %v1036_v7  ;;  %v1039_v11 = vpop.f32.mrb[2].mxu0  ;;  %v1058_v12 = vpop.f32.mrb[0].mxu1 }
 0x141   :  { %v1040_v13 = vpop.f32.mrb[3].mxu0  ;;  %v1059_v16 = vpop.f32.mrb[1].mxu1 }
 0x142   :  { %v566_v14 = vadd.f32 %v1038_v10, %v944_v8  ;;  %v1041_v15 = vadd.f32 %v1040_v13, %v1039_v11  ;;  %v1060_v17 = vadd.f32 %v1059_v16, %v1058_v12  ;;  %v1061_v18 = vpop.f32.mrb[2].mxu1 }
 0x143   :  { %v1062_v20 = vpop.f32.mrb[3].mxu1 }
 0x144   :  { %v569_v19 = vadd.f32 %v1041_v15, %v944_v8  ;;  %v607_v21 = vadd.f32 %v1060_v17, %v566_v14  ;;  %v1063_v22 = vadd.f32 %v1062_v20, %v1061_v18 }
 0x146   :  { %v610_v23 = vadd.f32 %v1063_v22, %v569_v19 }
 0x148   :  { %v688_v24 = vpop.f32.mrb[4].mxu1 }
 0x149   :  { %v1110_v25 = vpop.f32.mrb[5].mxu1 }
 0x14a   :  { %v691_v26 = vpop.f32.mrb[6].mxu1 }
 0x14b   :  { %v1111_v27 = vpop.f32.mrb[7].mxu1 }
 0x15e   :  { %v1080_v28 = vpop.f32.mrb[4].mxu0 }
 0x15f   :  { %v1081_v29 = vpop.f32.mrb[5].mxu0 }
 0x160   :  { %v1082_v30 = vadd.f32 %v1081_v29, %v1080_v28  ;;  %v1083_v31 = vpop.f32.mrb[6].mxu0 }
 0x161   :  { %v1084_v32 = vpop.f32.mrb[7].mxu0 }
 0x162   :  { %v648_v33 = vadd.f32 %v1082_v30, %v607_v21  ;;  %v1085_v34 = vadd.f32 %v1084_v32, %v1083_v31 }
 0x164   :  { %v689_v35 = vadd.f32 %v688_v24, %v648_v33  ;;  %v651_v36 = vadd.f32 %v1085_v34, %v610_v23 }
 0x166   :  { %v692_v37 = vadd.f32 %v691_v26, %v651_v36  ;;  %v695_v39 = vmax.f32 %v689_v35, 0.0 }
 0x168   :  { %v696_v40 = vmax.f32 %v692_v37, 0.0 }
 0x16a   :  { %v697_v41 = vpack.c.bf16 %v696_v40, %v695_v39 }
 0x16c   :  { %1129 = vmatmul.mubr.bf16.vlgmr.msra.gmra.mrb[8].mxu1 %v697_v41 }
 0x23f   :  { %v802_v45 = vpop.f32.mrb[8].mxu1 }
 0x240   :  { %v803_v46 = vadd.f32 %v1002_v44, %v802_v45  ;;  %v1130_v47 = vpop.f32.mrb[9].mxu1 }
 0x241   :  { %v805_v48 = vpop.f32.mrb[10].mxu1 }
 0x242   :  { %v806_v49 = vadd.f32 %v1002_v44, %v805_v48  ;;  %v1131_v50 = vpop.f32.mrb[11].mxu1  ;;  %v809_v51 = vmax.f32 %v803_v46, 0.0 }
 0x244   :  { %v810_v52 = vmax.f32 %v806_v49, 0.0 }
 0x246   :  { %v811_v53 = vpack.c.bf16 %v810_v52, %v809_v51 }
 0x248   :  { %1149 = vmatmul.mubr.bf16.vlgmr.msra.gmra.mrb[8].mxu0 %v811_v53 }
 0x31b   :  { %v916_v54 = vpop.f32.mrb[8].mxu0 }
 0x31c   :  { %v917_v55 = vadd.f32 %v1011_v38, %v916_v54  ;;  %v1150_v56 = vpop.f32.mrb[9].mxu0 }
 0x31d   :  { %v919_v57 = vpop.f32.mrb[10].mxu0 }
 0x31e   :  { %923 = vst [vmem:[#allocation10] sm:$0xff] %v917_v55  ;;  %v920_v58 = vadd.f32 %v1011_v38, %v919_v57  ;;  %v1151_v59 = vpop.f32.mrb[11].mxu0 }
 0x320   :  { %924 = vst [vmem:[#allocation10 + $0x8] sm:$0xff] %v920_v58 }
 0x321   :  { %1339 = shalt.err (!%p1336_p8)
}
 0x322   :  { %s1340_s10 = scalar_lea.hbm %s1526_s7, 256 }
 0x323   :  { %p1341_p9 = scmp.ne.s32.totalorder %s1526_s7, %s1340_s10  ;;  %p1344_p10 = scmp.lt.u32.totalorder %s1340_s10, %s1526_s7 }
 0x325   :  { %p1346_p11 = pnand %p1344_p10, %p1341_p9 }
 0x327   :  { %1349 = shalt.err (!%p1346_p11)
}
 0x328   :  { %s1369_s18 = smov 128   ;;  %s1370_s0 = smov 8  }
 0x329   :  { %936 = dma.vmem_to_hbm [thread:$0]  %s931_s8, 256, %s1526_s7, [#allocation4], %s1369_s18, %s1369_s18, %s1370_s0  }
 0x32a   :  { %1356 = dma.done.wait [#allocation4], 256  }
 0x32b   :  { %1357 = vsyncadd [#allocation4], 4294967040 }
 0x32c   :  { %940 = vsyncpa [#allocation3], 1 }
 0x32d   :  { %941 = vsyncpa [#allocation6], 1 }
 0x32e   :  { %942 = vsyncpa [#allocation9], 1 }
 0x32f   :  { %943 = vsyncpa [#allocation4], 1 }

</bundles_post_ra>
